<compile_context>
chip_gen: v7x
topology: tpu7x:2x2x1
jax: 0.10.0
libtpu: 0.0.40
codegen_flags: <defaults>
</compile_context>

<pallas_src>
import numpy as np
import jax
import jax.numpy as jnp
from jax import lax
from jax.experimental import pallas as pl
from jax.experimental.pallas import tpu as pltpu


def _cdiv(a, b):
    return -(-a // b)


def _round_up(v, m):
    return ((v + m - 1) // m) * m


def _balanced_tile(dim, tile_max, align):
    """Largest tile <= tile_max (multiple of `align`) with minimal padding waste."""
    dim_a = _round_up(max(int(dim), 1), align)
    tile_max = max(align, min(int(tile_max), dim_a))
    n_tiles = _cdiv(dim_a, tile_max)
    return _round_up(_cdiv(dim_a, n_tiles), align)


# ----------------------------------------------------------------------------
# Kernels: fused (base + WaveFT-delta) linear, tiled over (M, N, K).
# The W + dW add runs on the VPU and hides under the MXU dot.
# ----------------------------------------------------------------------------
def _fused_linear_kernel_f32out(x_ref, w_ref, dw_ref, b_ref, o_ref):
    """float32 output: accumulate directly into the resident output block."""
    k = pl.program_id(2)

    @pl.when(k == 0)
    def _():
        o_ref[...] = jnp.zeros_like(o_ref)

    # x: (tm, tk); w/dw: (tn, tk) in PyTorch (out, in) layout, contraction on
    # dim 1 of both (i.e. x @ (w+dw).T) on the MXU with f32 accumulation.
    o_ref[...] += lax.dot_general(
        x_ref[...], w_ref[...] + dw_ref[...],
        dimension_numbers=(((1,), (1,)), ((), ())),
        preferred_element_type=jnp.float32)

    @pl.when(k == pl.num_programs(2) - 1)
    def _():
        o_ref[...] += b_ref[...]


def _fused_linear_kernel_acc(x_ref, w_ref, dw_ref, b_ref, o_ref, acc_ref):
    """Narrow output dtype: f32 scratch accumulator, cast in the epilogue."""
    k = pl.program_id(2)

    @pl.when(k == 0)
    def _():
        acc_ref[...] = jnp.zeros_like(acc_ref)

    acc_ref[...] += lax.dot_general(
        x_ref[...], w_ref[...] + dw_ref[...],
        dimension_numbers=(((1,), (1,)), ((), ())),
        preferred_element_type=jnp.float32)

    @pl.when(k == pl.num_programs(2) - 1)
    def _():
        o_ref[...] = (acc_ref[...] + b_ref[...]).astype(o_ref.dtype)


def waveft_linear_forward(x, weight, bias, delta_w, *,
                          tm=512, tn=512, tk=None, use_bf16=True):
    """WaveFT-Linear forward.

    x:       (..., in_features)
    weight:  (out_features, in_features)   PyTorch layout
    bias:    (out_features,) or None
    delta_w: (out_features, in_features)   adapter delta (already * scaling)
    """
    orig_shape = x.shape
    K = int(orig_shape[-1])
    x2 = x.reshape(-1, K)
    M = int(x2.shape[0])
    N = int(weight.shape[0])
    out_dtype = x.dtype

    compute_dtype = jnp.bfloat16 if use_bf16 else x2.dtype
    sublane = 16 if compute_dtype == jnp.bfloat16 else 8
    if tk is None:
        tk = 2048 if compute_dtype == jnp.bfloat16 else 1024

    # Balanced tiles: last tile nearly full instead of rounding up to defaults.
    tm = _balanced_tile(M, tm, sublane)
    tn = _balanced_tile(N, tn, 128)
    tk = _balanced_tile(K, tk, 128)

    # v7x megacore: guarantee >= 2 tiles over the two "parallel" grid axes
    # whenever the problem is splittable, so both TensorCores get work.
    M_a = _round_up(M, sublane)
    N_a = _round_up(N, 128)
    while _cdiv(M_a, tm) * _cdiv(N_a, tn) < 2:
        if N_a > 128 and tn > 128:
            tn = _balanced_tile(N, _cdiv(tn, 2), 128)
        elif M_a > sublane and tm > sublane:
            tm = _balanced_tile(M, _cdiv(tm, 2), sublane)
        else:
            break

    Mp = _round_up(M, tm)
    Np = _round_up(N, tn)
    Kp = _round_up(K, tk)
    grid_m, grid_n, grid_k = Mp // tm, Np // tn, Kp // tk

    # Pad inputs to tile multiples (near no-op thanks to balanced tiles).
    x2 = x2.astype(compute_dtype)
    w = jnp.asarray(weight).astype(compute_dtype)
    dw = jnp.asarray(delta_w).astype(compute_dtype)
    if bias is None:
        b2 = jnp.zeros((1, Np), jnp.float32)
    else:
        b2 = jnp.asarray(bias, jnp.float32).reshape(1, N)
        if Np != N:
            b2 = jnp.pad(b2, ((0, 0), (0, Np - N)))
    if (Mp, Kp) != (M, K):
        x2 = jnp.pad(x2, ((0, Mp - M), (0, Kp - K)))
    if (Np, Kp) != (N, K):
        w = jnp.pad(w, ((0, Np - N), (0, Kp - K)))
        dw = jnp.pad(dw, ((0, Np - N), (0, Kp - K)))

    # Deeper weight pipeline only in the weight-streaming-bound regime (small M,
    # several K steps) — mainly a v5e (low HBM BW) latency-hiding measure.
    weight_buffers = 3 if (grid_m == 1 and grid_k >= 3) else 2

    def _weight_spec():
        idx = lambda i, j, k: (j, k)
        if weight_buffers > 2:
            try:
                return pl.BlockSpec((tn, tk), idx,
                                    pipeline_mode=pl.Buffered(weight_buffers))
            except (TypeError, AttributeError):
                pass  # older BlockSpec signature: fall back to double buffering
        return pl.BlockSpec((tn, tk), idx)

    in_it = jnp.dtype(compute_dtype).itemsize
    out_it = jnp.dtype(out_dtype).itemsize
    use_acc_scratch = jnp.dtype(out_dtype) != jnp.dtype(jnp.float32)

    vmem_est = (2 * tm * tk * in_it                      # x (double-buffered)
                + 2 * weight_buffers * tn * tk * in_it   # W and dW buffers
                + 2 * tm * tn * out_it                   # output
                + (tm * tn * 4 if use_acc_scratch else 0)
                + 2 * tn * 4)                            # bias tile
    # 40 MiB cap: safe on v7x (64 MiB physical VMEM), ample on v5e/v6e.
    vmem_limit = int(min(40 * 1024 * 1024,
                         max(int(1.5 * vmem_est), 16 * 1024 * 1024)))

    cost = pl.CostEstimate(
        flops=2 * Mp * Np * Kp + grid_m * Np * Kp,        # matmul + in-kernel W+dW add
        transcendentals=0,
        bytes_accessed=(grid_n * Mp * Kp * in_it          # x re-read per j tile
                        + 2 * grid_m * Np * Kp * in_it    # W and dW re-read per i tile
                        + Mp * Np * out_it                # output write
                        + grid_m * Np * 4),               # bias
    )

    kernel = _fused_linear_kernel_acc if use_acc_scratch else _fused_linear_kernel_f32out
    scratch = [pltpu.VMEM((tm, tn), jnp.float32)] if use_acc_scratch else []

    out = pl.pallas_call(
        kernel,
        out_shape=jax.ShapeDtypeStruct((Mp, Np), out_dtype),
        grid_spec=pltpu.PrefetchScalarGridSpec(
            num_scalar_prefetch=0,
            grid=(grid_m, grid_n, grid_k),
            in_specs=[
                pl.BlockSpec((tm, tk), lambda i, j, k: (i, k)),   # activations
                _weight_spec(),                                   # base weight (out, in)
                _weight_spec(),                                   # adapter delta (out, in)
                pl.BlockSpec((1, tn), lambda i, j, k: (0, j)),    # bias
            ],
            out_specs=pl.BlockSpec((tm, tn), lambda i, j, k: (i, j)),
            scratch_shapes=scratch,
        ),
        compiler_params=pltpu.CompilerParams(
            dimension_semantics=("parallel", "parallel", "arbitrary"),
            vmem_limit_bytes=vmem_limit),
        cost_estimate=cost,
    )(x2, w, dw, b2)

    out = out[:M, :N]
    return out.reshape(*orig_shape[:-1], N)


# ----------------------------------------------------------------------------
# WaveFT delta-weight construction (plain JAX weight-prep glue).
# pywt/ptwt convention: coeffs = (cA, (cH, cV, cD)) with cA='aa', cH='da'
# (detail along axis 0), cV='ad', cD='dd'; Haar pair a=(x0+x1)/sqrt2,
# d=(x0-x1)/sqrt2  ->  x0=(a+d)/sqrt2, x1=(a-d)/sqrt2.
# ----------------------------------------------------------------------------
def haar_idwt2(cA, cH, cV, cD):
    """Single-level inverse 2D Haar (db1) DWT (pywt coefficient layout)."""
    inv_sqrt2 = np.float32(1.0 / np.sqrt(2.0))
    # inverse along axis 0: pair coefficients sharing the same axis-1 filtering
    L = jnp.stack([(cA + cH) * inv_sqrt2, (cA - cH) * inv_sqrt2],
                  axis=1).reshape(2 * cA.shape[0], cA.shape[1])
    Hd = jnp.stack([(cV + cD) * inv_sqrt2, (cV - cD) * inv_sqrt2],
                   axis=1).reshape(2 * cV.shape[0], cV.shape[1])
    # inverse along axis 1
    out = jnp.stack([(L + Hd) * inv_sqrt2, (L - Hd) * inv_sqrt2],
                    axis=2).reshape(L.shape[0], 2 * L.shape[1])
    return out


def get_delta_weight(spectrum, indices, out_features, in_features, scaling,
                     wavelet_family="db1"):
    """JAX port of WaveFTLayer.get_delta_weight (use_idwt=True)."""
    # TODO(synk): only db1 (Haar) waverec2d is implemented; other wavelet
    # families would need their reconstruction filter banks.
    if wavelet_family != "db1":
        raise NotImplementedError("only db1 (Haar) is implemented")
    reduction_rows, reduction_cols = 0, 0   # db1 -> (0, 0)
    padded_out = out_features + reduction_rows
    padded_in = in_features + reduction_cols
    if padded_out % 2 != 0:
        padded_out += 1
    if padded_in % 2 != 0:
        padded_in += 1
    row_off = (padded_out - out_features) // 2
    col_off = (padded_in - in_features) // 2

    rows = indices[0] + row_off
    cols = indices[1] + col_off
    valid = (rows < padded_out) & (cols < padded_in)   # always true for db1
    rows = jnp.where(valid, rows, 0)
    cols = jnp.where(valid, cols, 0)
    vals = jnp.where(valid, spectrum, 0.0).astype(spectrum.dtype)
    dense = jnp.zeros((padded_out, padded_in), spectrum.dtype)
    dense = dense.at[rows, cols].add(vals)   # randperm indices are unique

    H2, W2 = padded_out // 2, padded_in // 2
    cA = dense[:H2, :W2]
    cH = dense[:H2, W2:]
    cV = dense[H2:, :W2]
    cD = dense[H2:, W2:]
    dw = haar_idwt2(cA, cH, cV, cD) * scaling

    if dw.shape[0] != out_features or dw.shape[1] != in_features:
        sr = (dw.shape[0] - out_features) // 2
        sc = (dw.shape[1] - in_features) // 2
        dw = dw[sr:sr + out_features, sc:sc + in_features]
    return dw


# ----------------------------------------------------------------------------
# Driver
# ----------------------------------------------------------------------------
if __name__ == "__main__":
    batch, seq = 2, 8
    in_features, out_features = 32, 32
    n_frequency = 64
    scaling = 150.0
    random_loc_seed = 777

    key = jax.random.PRNGKey(0)
    k_x, k_w, k_b, k_s = jax.random.split(key, 4)

    x = jax.random.normal(k_x, (batch, seq, in_features), jnp.float32)
    base_weight = jax.random.normal(k_w, (out_features, in_features), jnp.float32) * 0.05
    base_bias = jax.random.normal(k_b, (out_features,), jnp.float32) * 0.05
    # init_weights=False path: spectrum = randn(n_frequency) * 0.01
    spectrum = jax.random.normal(k_s, (n_frequency,), jnp.float32) * 0.01

    # TODO(synk): torch.randperm(Generator(seed=777)) is not reproducible in JAX;
    # locations are self-consistent here but not bit-identical to the PT module.
    perm = jax.random.permutation(jax.random.PRNGKey(random_loc_seed),
                                  out_features * in_features)[:n_frequency]
    indices = jnp.stack([perm // in_features, perm % in_features], axis=0)

    delta_w = get_delta_weight(spectrum, indices, out_features, in_features, scaling)

    # pure-JAX reference of the (unfused) forward pass
    ref = (x @ base_weight.T + base_bias) + (x @ delta_w.T)

    # 1) f32-operand validation run (tight tolerance)
    out_f32 = waveft_linear_forward(x, base_weight, base_bias, delta_w,
                                    use_bf16=False)
    out_f32 = jax.block_until_ready(out_f32)
    assert out_f32.shape == (batch, seq, out_features)
    assert out_f32.dtype == x.dtype
    np.testing.assert_allclose(np.asarray(out_f32), np.asarray(ref),
                               rtol=1e-4, atol=1e-4)

    # 2) default performance config: bf16 operands, f32 accumulation
    #    (bf16 operands -> looser tolerance vs the f32 reference)
    out_bf16 = waveft_linear_forward(x, base_weight, base_bias, delta_w)
    out_bf16 = jax.block_until_ready(out_bf16)
    assert out_bf16.shape == (batch, seq, out_features)
    assert out_bf16.dtype == x.dtype
    np.testing.assert_allclose(np.asarray(out_bf16), np.asarray(ref),
                               rtol=5e-2, atol=5e-2)

    print("KERNEL_OK")
</pallas_src>

<mosaic_0001>
module attributes {stable_mosaic.version = 11 : i64} {
  func.func @_fused_linear_kernel_f32out(%arg0: i32, %arg1: i32, %arg2: i32, %arg3: memref<8x128xf32, #tpu.memory_space<vmem>>, %arg4: memref<128x128xf32, #tpu.memory_space<vmem>>, %arg5: memref<128x128xf32, #tpu.memory_space<vmem>>, %arg6: memref<1x128xf32, #tpu.memory_space<vmem>>, %arg7: memref<8x128xf32, #tpu.memory_space<vmem>>) attributes {dimension_semantics = [#tpu.dimension_semantics<parallel>, #tpu.dimension_semantics<parallel>, #tpu.dimension_semantics<arbitrary>], iteration_bounds = array<i64: 2, 1, 1>, scalar_prefetch = 0 : i64, scratch_operands = 0 : i64, tpu.core_type = #tpu.core_type<tc>, window_params = [{transform_indices = @transform_0, window_bounds = array<i64: 8, 128>}, {transform_indices = @transform_1, window_bounds = array<i64: 128, 128>}, {transform_indices = @transform_2, window_bounds = array<i64: 128, 128>}, {transform_indices = @transform_3, window_bounds = array<i64: 1, 128>}, {transform_indices = @transform_4, window_bounds = array<i64: 8, 128>}]} {
    %c0_i32 = arith.constant 0 : i32
    %0 = arith.cmpi eq, %arg2, %c0_i32 : i32
    %1 = arith.extui %0 : i1 to i32
    %c0_i32_0 = arith.constant 0 : i32
    %2 = arith.cmpi ne, %1, %c0_i32_0 : i32
    scf.if %2 {
      %cst_12 = arith.constant 0.000000e+00 : f32
      %14 = vector.broadcast %cst_12 : f32 to vector<8x128xf32>
      %c0_13 = arith.constant 0 : index
      %c0_14 = arith.constant 0 : index
      %15 = vector.load %arg7[%c0_13, %c0_14] : memref<8x128xf32, #tpu.memory_space<vmem>>, vector<8x128xf32>
      tpu.vector_store %arg7[%c0_13, %c0_14], %14 {strides = array<i32>} : memref<8x128xf32, #tpu.memory_space<vmem>>, vector<8x128xf32>,
    } else {
    }
    %c0 = arith.constant 0 : index
    %c0_1 = arith.constant 0 : index
    %3 = vector.load %arg7[%c0, %c0_1] : memref<8x128xf32, #tpu.memory_space<vmem>>, vector<8x128xf32>
    %c0_2 = arith.constant 0 : index
    %c0_3 = arith.constant 0 : index
    %4 = vector.load %arg3[%c0_2, %c0_3] : memref<8x128xf32, #tpu.memory_space<vmem>>, vector<8x128xf32>
    %c0_4 = arith.constant 0 : index
    %c0_5 = arith.constant 0 : index
    %5 = vector.load %arg4[%c0_4, %c0_5] : memref<128x128xf32, #tpu.memory_space<vmem>>, vector<128x128xf32>
    %c0_6 = arith.constant 0 : index
    %c0_7 = arith.constant 0 : index
    %6 = vector.load %arg5[%c0_6, %c0_7] : memref<128x128xf32, #tpu.memory_space<vmem>>, vector<128x128xf32>
    %7 = arith.addf %5, %6 : vector<128x128xf32>
    %cst = arith.constant dense<0.000000e+00> : vector<8x128xf32>
    %8 = tpu.matmul %4, %7, %cst {dimension_numbers = #tpu.dot_dimension_numbers<[1], [1], [0], [0], [0, 0, 1, 0], [], []>} : vector<8x128xf32>, vector<128x128xf32>, vector<8x128xf32> -> vector<8x128xf32>
    %9 = arith.addf %3, %8 : vector<8x128xf32>
    %c0_8 = arith.constant 0 : index
    %c0_9 = arith.constant 0 : index
    %10 = vector.load %arg7[%c0_8, %c0_9] : memref<8x128xf32, #tpu.memory_space<vmem>>, vector<8x128xf32>
    tpu.vector_store %arg7[%c0_8, %c0_9], %9 {strides = array<i32>} : memref<8x128xf32, #tpu.memory_space<vmem>>, vector<8x128xf32>,
    %c0_i32_10 = arith.constant 0 : i32
    %11 = arith.cmpi eq, %arg2, %c0_i32_10 : i32
    %12 = arith.extui %11 : i1 to i32
    %c0_i32_11 = arith.constant 0 : i32
    %13 = arith.cmpi ne, %12, %c0_i32_11 : i32
    scf.if %13 {
      %c0_12 = arith.constant 0 : index
      %c0_13 = arith.constant 0 : index
      %14 = vector.load %arg7[%c0_12, %c0_13] : memref<8x128xf32, #tpu.memory_space<vmem>>, vector<8x128xf32>
      %c0_14 = arith.constant 0 : index
      %c0_15 = arith.constant 0 : index
      %15 = vector.load %arg6[%c0_14, %c0_15] : memref<1x128xf32, #tpu.memory_space<vmem>>, vector<1x128xf32>
      %16 = vector.broadcast %15 : vector<1x128xf32> to vector<8x128xf32>
      %17 = arith.addf %14, %16 : vector<8x128xf32>
      %c0_16 = arith.constant 0 : index
      %c0_17 = arith.constant 0 : index
      %18 = vector.load %arg7[%c0_16, %c0_17] : memref<8x128xf32, #tpu.memory_space<vmem>>, vector<8x128xf32>
      tpu.vector_store %arg7[%c0_16, %c0_17], %17 {strides = array<i32>} : memref<8x128xf32, #tpu.memory_space<vmem>>, vector<8x128xf32>,
    } else {
    }
    return
  }
  func.func @transform_0(%arg0: i32, %arg1: i32, %arg2: i32) -> (i32, i32) {
    %c0_i32 = arith.constant 0 : i32
    return %arg0, %arg2 : i32, i32
  }
  func.func @transform_1(%arg0: i32, %arg1: i32, %arg2: i32) -> (i32, i32) {
    %c0_i32 = arith.constant 0 : i32
    return %arg1, %arg2 : i32, i32
  }
  func.func @transform_2(%arg0: i32, %arg1: i32, %arg2: i32) -> (i32, i32) {
    %c0_i32 = arith.constant 0 : i32
    return %arg1, %arg2 : i32, i32
  }
  func.func @transform_3(%arg0: i32, %arg1: i32, %arg2: i32) -> (i32, i32) {
    %c0_i32 = arith.constant 0 : i32
    %c0_i32_0 = arith.constant 0 : i32
    return %c0_i32, %arg1 : i32, i32
  }
  func.func @transform_4(%arg0: i32, %arg1: i32, %arg2: i32) -> (i32, i32) {
    %c0_i32 = arith.constant 0 : i32
    return %arg0, %arg1 : i32, i32
  }
}

</mosaic_0001>

<bundles_post_ra>
// kernel: tpu_custom_call.1
= control target key start
LH: loop header
LB: loop body
LE: loop exit
PB: predicated region body
PF: predicated region fallthrough
CT: control target
= control target key end

     0   :  { %9 = vsyncpa [#allocation3], 0  ;;  %s1240_s0 = inlined_call_operand.hbm [shape: f32[16,128], index: 0, kind: input, shape index: {}]   ;;  %s1241_s1 = inlined_call_operand.hbm [shape: f32[128,128], index: 1, kind: input, shape index: {}]   ;;  %s1242_s2 = inlined_call_operand.hbm [shape: f32[128,128], index: 2, kind: input, shape index: {}]   ;;  %s1243_s3 = inlined_call_operand.vmem [shape: f32[1,128], index: 3, kind: input, shape index: {}]   ;;  %s1244_s4 = inlined_call_operand.hbm [shape: f32[16,128], index: 4, kind: output, shape index: {}]  }
   0x1   :  { %11 = vsyncpa [#allocation3 + $0x1], 0 }
   0x2   :  { %12 = vsyncpa [#allocation6], 0 }
   0x3   :  { %13 = vsyncpa [#allocation4], 0 }
   0x4   :  { %15 = vsyncpa [#allocation4 + $0x1], 0  ;;  %s972_s15 = smov 0   ;;  %s974_s16 = smov 0  }
   0x5   :  { %s976_s17 = smov 0   ;;  %s978_s18 = smov 0  }
   0x6   :  { %s980_s19 = smov 0   ;;  %s982_s20 = smov 0  }
   0x7 LB: > { %s581_s21 = sadd.s32 4294967295, %s936_s20   ;;  %s582_s22 = sadd.s32 4294967294, %s936_s20   ;;  %s936_s20 = sphi %s982_s20, %s21_s20   ;;  %s932_s19 = sphi %s980_s19, %s1266_s19   ;;  %s928_s18 = sphi %s978_s18, %s1265_s18   ;;  %s924_s17 = sphi %s976_s17, %s1264_s17   ;;  %s920_s16 = sphi %s974_s16, %s1263_s16   ;;  %s916_s15 = sphi %s972_s15, %s1262_s15  }
   0x8   : > { %p62_p0 = scmp.ne.s32.totalorder %s920_s16, %s916_s15  ;;  %p1006_p1 = scmp.eq.s32.totalorder %s581_s21, 0 }
   0x9   : > { %p1010_p2 = scmp.eq.s32.totalorder %s581_s21, 1  ;;  %p176_p3 = scmp.eq.s32.totalorder %s582_s22, 1 }
   0xa   : > { %s1249_s23 = scalar_select %p1006_p1, 1, 0 }
   0xb   : > { %p1016_p4 = por %p1006_p1, %p62_p0  ;;  %p583_p5 = scmp.ge.s32.totalorder %s936_s20, 1 }
   0xc   : > { %p1021_p6 = por %p176_p3, %p62_p0  ;;  %p183_p7 = scmp.lt.s32.totalorder %s936_s20, 3 }
   0xd   : > { %s1251_s25 = scalar_select %p1016_p4, 1, 0 }
   0xe   : > { %s1252_s26 = scalar_select %p1021_p6, 1, 0 }
   0xf   : > { %p1026_p8 = pnand %p583_p5, %p183_p7  ;;  %s938_s28 = smov [#allocation5]  }
  0x10   : > { %s199_s29 = sshll.u32 %s938_s28, 4  ;;  %s939_s5 = smov [#allocation7]   ;;  %s1030_s29 = int_to_ptr.vmem [resolvable:$true] %s199_s29 }
  0x11   : > { %p688_p9 = pneg %p1026_p8  ;;  %s216_s6 = sshll.u32 %s939_s5, 4  ;;  %s1041_s6 = int_to_ptr.vmem [resolvable:$true] %s216_s6 }
  0x12   : > { %s764_s9 = scalar_lea.hbm %s1241_s1, 2048 }
  0x13   : > { %p1037_p11 = pnand %p688_p9, %p1006_p1  ;;  %p765_p12 = scmp.ne.s32.totalorder %s1241_s1, %s764_s9 }
  0x14   : > { %p771_p5 = scmp.lt.u32.totalorder %s764_s9, %s1241_s1 }
  0x15   : > { %p766_p13 = pneg %p1037_p11 }
  0x17   : > { %p767_p0 = pnand %p766_p13, %p765_p12 }
  0x19   : > { %p768_p3 = pneg %p767_p0 }
  0x1b   : > { %p773_p7 = pnand %p771_p5, %p768_p3 }
  0x1d   : > { %776 = shalt.err (!%p773_p7)
}
  0x1e   : > { %s777_s14 = scalar_lea.vmem %s1030_s29, 2048  ;;  %p785_p1 = scmp.lt.s32.totalorder %s1030_s29, %s1030_s29 }
  0x1f   : > { %p778_p9 = scmp.ne.s32.totalorder %s1030_s29, %s777_s14  ;;  %p786_p12 = scmp.lt.s32.totalorder %s777_s14, %s777_s14 }
  0x21   : > { %p780_p10 = pnand %p778_p9, %p766_p13  ;;  %p787_p0 = por %p786_p12, %p785_p1 }
  0x23   : > { %p781_p6 = pneg %p780_p10 }
  0x25   : > { %p788_p4 = pnand %p787_p0, %p781_p6 }
  0x27   : > { %791 = shalt.err (!%p788_p4)
}
  0x28   : > { %s940_s21 = smov 128   ;;  %s941_s22 = smov 8  }
  0x29   : > { %691 = dma.hbm_to_vmem [thread:$0]  (!%p1037_p11), %s1241_s1, 2048, %s1030_s29, [#allocation6], %s940_s21, %s940_s21, %s941_s22  }
  0x2a   : > { %s792_s9 = scalar_lea.hbm %s1242_s2, 2048 }
  0x2b   : > { %p793_p1 = scmp.ne.s32.totalorder %s1242_s2, %s792_s9  ;;  %p799_p10 = scmp.lt.u32.totalorder %s792_s9, %s1242_s2 }
  0x2d   : > { %p795_p4 = pnand %p793_p1, %p766_p13 }
  0x2f   : > { %p796_p6 = pneg %p795_p4 }
  0x31   : > { %p801_p3 = pnand %p799_p10, %p796_p6 }
  0x33   : > { %804 = shalt.err (!%p801_p3)
}
  0x34   : > { %s805_s29 = scalar_lea.vmem %s1041_s6, 2048  ;;  %p813_p12 = scmp.lt.s32.totalorder %s1041_s6, %s1041_s6 }
  0x35   : > { %p806_p5 = scmp.ne.s32.totalorder %s1041_s6, %s805_s29  ;;  %p814_p0 = scmp.lt.s32.totalorder %s805_s29, %s805_s29 }
  0x37   : > { %p808_p7 = pnand %p806_p5, %p766_p13  ;;  %p815_p1 = por %p814_p0, %p813_p12 }
  0x39   : > { %p809_p9 = pneg %p808_p7 }
  0x3b   : > { %p816_p4 = pnand %p815_p1, %p809_p9 }
  0x3d   : > { %819 = shalt.err (!%p816_p4)
}
  0x3e   : > { %694 = dma.hbm_to_vmem [thread:$0]  (!%p1037_p11), %s1242_s2, 2048, %s1041_s6, [#allocation6], %s940_s21, %s940_s21, %s941_s22  }
  0x3f   : > { %s40_s5 = sadd.s32 1, %s932_s19  ;;  %s49_s7 = sadd.s32 1, %s924_s17 }
  0x40   : > { %p42_p13 = scmp.ge.s32.totalorder %s40_s5, 2  ;;  %p56_p6 = scmp.ne.s32.totalorder %s924_s17, %s920_s16 }
  0x41   : > { %p57_p10 = scmp.eq.s32.totalorder %s936_s20, 0  ;;  %p705_p3 = scmp.lt.s32.totalorder %s936_s20, 2 }
  0x42   : > { %s1268_s5 = smov (%p42_p13, %s40_s5), 0  ;;  %p1105_p7 = por %p1010_p2, %p56_p6 }
  0x43   : > { %p58_p5 = por %p57_p10, %p56_p6  ;;  %s44_s8 = ssub.s32 %s932_s19, %s1268_s5 }
  0x44   : > { %s1255_s30 = scalar_select %p1105_p7, 1, 0 }
  0x45   : > { %s236_s9 = sand.u32 1, %s924_s17   ;;  %p47_p9 = scmp.eq.s32.totalorder %s44_s8, 0 }
  0x46   : > { %s588_s6 = sshll.u32 %s236_s9, 3  ;;  %s589_s21 = sshll.u32 %s932_s19, 7 }
  0x47   : > { %s1114_s22 = scalar_select %p47_p9, %s924_s17, %s49_s7  }
  0x48   : > { %s1119_s12 = scalar_lea.hbm %s1240_s0, %s589_s21  ;;  %s240_s24 = scalar_lea.vmem [#allocation2], %s588_s6 }
  0x49   : > { %s248_s13 = sshll.u32 %s240_s24, 4  ;;  %p1123_p2 = pnand %p705_p3, %p58_p5  ;;  %s1127_s13 = int_to_ptr.vmem [resolvable:$true] %s248_s13 }
  0x4a   : > { %s237_s14 = scalar_lea.sflag [#allocation3], %s236_s9  ;;  %s820_s28 = scalar_lea.hbm %s1119_s12, 128 }
  0x4b   : > { %p821_p11 = scmp.ne.s32.totalorder %s1119_s12, %s820_s28  ;;  %p822_p12 = pneg %p1123_p2 }
  0x4c   : > { %s825_s6 = scalar_lea.hbm %s1240_s0, 256  ;;  %p826_p4 = scmp.lt.u32.totalorder %s1119_s12, %s1240_s0 }
  0x4d   : > { %p823_p0 = pnand %p822_p12, %p821_p11  ;;  %p827_p13 = scmp.lt.u32.totalorder %s825_s6, %s820_s28 }
  0x4e   : > { %p829_p10 = scmp.lt.u32.totalorder %s820_s28, %s1119_s12 }
  0x4f   : > { %p824_p1 = pneg %p823_p0  ;;  %p828_p6 = por %p827_p13, %p826_p4 }
  0x51   : > { %p830_p3 = por %p829_p10, %p828_p6 }
  0x53   : > { %p831_p5 = pnand %p830_p3, %p824_p1 }
  0x55   : > { %834 = shalt.err (!%p831_p5)
}
  0x56   : > { %s835_s9 = scalar_lea.vmem %s1127_s13, 128  ;;  %s942_s11 = smov [#allocation2]  }
  0x57   : > { %p836_p9 = scmp.ne.s32.totalorder %s1127_s13, %s835_s9  ;;  %s840_s24 = sshll.u32 %s942_s11, 4  ;;  %s841_s24 = int_to_ptr.vmem [resolvable:$false] %s840_s24 }
  0x58   : > { %s842_s7 = scalar_lea.vmem %s841_s24, 256  ;;  %p843_p7 = scmp.lt.s32.totalorder %s1127_s13, %s841_s24 }
  0x59   : > { %p838_p11 = pnand %p836_p9, %p822_p12  ;;  %p844_p4 = scmp.lt.s32.totalorder %s842_s7, %s835_s9 }
  0x5b   : > { %p839_p0 = pneg %p838_p11  ;;  %p845_p13 = por %p844_p4, %p843_p7 }
  0x5d   : > { %p846_p6 = pnand %p845_p13, %p839_p0 }
  0x5f   : > { %849 = shalt.err (!%p846_p6)
}
  0x60   : > { %698 = dma.hbm_to_vmem [thread:$0]  (!%p1123_p2), %s1119_s12, 128, %s1127_s13, %s237_s14  }
  0x61   : > { %257 = sbr.rel (%p1026_p8) target bundleno = 406 (0x196), region = 36  ;;  %s1157_s28 = sand.u32 (!%p1026_p8), 1, %s920_s16  }
  0x62   : > { %s591_s8 = sshll.u32 (!%p1026_p8), %s1157_s28, 3  ;;  %s260_s6 = scalar_lea.sflag (!%p1026_p8), [#allocation3], %s1157_s28 }
  0x63   : > { %s1163_s21 = scalar_lea.vmem (!%p1026_p8), [#allocation2], %s591_s8  ;;  %p1257_p7 = scmp.ne.s32.totalorder (!%p1026_p8), %s1251_s25, 0 }
  0x68   : > { %903 = dma.done.wait (%p1257_p7), %s260_s6, 128  }
  0x69   : > { %905 = vsyncadd (%p1257_p7), %s260_s6, 4294967168  ;;  %p1258_p2 = scmp.ne.s32.totalorder %s1249_s23, 0 }
  0x6b   : > { %907 = dma.done.wait (%p1258_p2), [#allocation6], 4096  }
  0x6c   : > { %909 = vsyncadd (%p1258_p2), [#allocation6], 4294963200  ;;  %v943_v0 = vmov 0.0|0.0   ;;  %vm944_vm0 = vmmov 0   ;;  %v945_v1 = vmov 0.0   ;;  %v311_v2 = vld [vmem:[#allocation5] sm:$0xff] }
  0x6d   : > { %652 = vmatprep.subr.bf16.mxu0 %v943_v0  ;;  %649 = vmatprep.mubr.msk.f32.mxu0 %vm944_vm0, %v945_v1  ;;  %v312_v3 = vld [vmem:[#allocation5 + $0x8] sm:$0xff]  ;;  %v327_v4 = vld [vmem:[#allocation7] sm:$0xff]  ;;  %v313_v8 = vld [vmem:[#allocation5 + $0x10] sm:$0xff]  ;;  %s597_s27 = sshll.u32 %s928_s18, 7  ;;  %s298_s12 = scalar_lea.vmem [#allocation8], %s591_s8 }
  0x6e   : > { %v328_v5 = vld [vmem:[#allocation7 + $0x8] sm:$0xff]  ;;  %v343_v6 = vadd.f32 %v327_v4, %v311_v2  ;;  %v314_v9 = vld [vmem:[#allocation5 + $0x18] sm:$0xff]  ;;  %v329_v10 = vld [vmem:[#allocation7 + $0x10] sm:$0xff]  ;;  %s459_s13 = sshll.u32 %s298_s12, 4  ;;  %s1191_s10 = scalar_lea.hbm %s1244_s4, %s597_s27  ;;  %s1193_s13 = int_to_ptr.vmem [resolvable:$true] %s459_s13 }
  0x6f   : > { %v344_v7 = vadd.f32 %v328_v5, %v312_v3  ;;  %v330_v11 = vld [vmem:[#allocation7 + $0x18] sm:$0xff]  ;;  %v345_v13 = vadd.f32 %v329_v10, %v313_v8  ;;  %v315_v16 = vld [vmem:[#allocation5 + $0x20] sm:$0xff]  ;;  %v316_v17 = vld [vmem:[#allocation5 + $0x28] sm:$0xff]  ;;  %s445_s9 = scalar_lea.sflag [#allocation4], %s1157_s28  ;;  %s850_s11 = scalar_lea.vmem %s1193_s13, 128 }
  0x70   : > { %v346_v14 = vadd.f32 %v330_v11, %v314_v9  ;;  %v331_v18 = vld [vmem:[#allocation7 + $0x20] sm:$0xff]  ;;  %v332_v19 = vld [vmem:[#allocation7 + $0x28] sm:$0xff]  ;;  %v317_v23 = vld [vmem:[#allocation5 + $0x30] sm:$0xff]  ;;  %p851_p8 = scmp.ne.s32.totalorder %s1193_s13, %s850_s11  ;;  %p1259_p12 = scmp.ne.s32.totalorder %s1255_s30, 0 }
  0x71   : > { %v653_v12 = vpack.c.bf16 %v344_v7, %v343_v6  ;;  %v347_v20 = vadd.f32 %v331_v18, %v315_v16  ;;  %v348_v21 = vadd.f32 %v332_v19, %v316_v17  ;;  %v318_v24 = vld [vmem:[#allocation5 + $0x38] sm:$0xff]  ;;  %v333_v25 = vld [vmem:[#allocation7 + $0x30] sm:$0xff]  ;;  %v319_v30 = vld [vmem:[#allocation5 + $0x40] sm:$0xff]  ;;  %s946_s18 = smov [#allocation8]  }
  0x72   : > { %v656_v15 = vpack.c.bf16 %v346_v14, %v345_v13  ;;  %v334_v26 = vld [vmem:[#allocation7 + $0x38] sm:$0xff]  ;;  %v349_v27 = vadd.f32 %v333_v25, %v317_v23  ;;  %v320_v31 = vld [vmem:[#allocation5 + $0x48] sm:$0xff]  ;;  %v335_v32 = vld [vmem:[#allocation7 + $0x40] sm:$0xff]  ;;  %p852_p1 = pnand %p851_p8, %p1259_p12  ;;  %s854_s24 = sshll.u32 %s946_s18, 4  ;;  %s855_s24 = int_to_ptr.vmem [resolvable:$false] %s854_s24 }
  0x73   : > { %654 = vmatpush3.bf16.xpose.msra.mxu0 %v653_v12  ;;  %v659_v22 = vpack.c.bf16 %v348_v21, %v347_v20  ;;  %v350_v28 = vadd.f32 %v334_v26, %v318_v24  ;;  %v336_v33 = vld [vmem:[#allocation7 + $0x48] sm:$0xff]  ;;  %v351_v34 = vadd.f32 %v335_v32, %v319_v30  ;;  %v321_v37 = vld [vmem:[#allocation5 + $0x50] sm:$0xff]  ;;  %v322_v38 = vld [vmem:[#allocation5 + $0x58] sm:$0xff]  ;;  %s856_s7 = scalar_lea.vmem %s855_s24, 256  ;;  %p857_p3 = scmp.lt.s32.totalorder %s1193_s13, %s855_s24 }
  0x74   : > { %655 = vmatprep.subr.bf16.mxu0 %v943_v0  ;;  %v352_v35 = vadd.f32 %v336_v33, %v320_v31  ;;  %v337_v39 = vld [vmem:[#allocation7 + $0x50] sm:$0xff]  ;;  %v338_v40 = vld [vmem:[#allocation7 + $0x58] sm:$0xff]  ;;  %v323_v44 = vld [vmem:[#allocation5 + $0x60] sm:$0xff]  ;;  %p853_p10 = pneg %p852_p1  ;;  %p858_p5 = scmp.lt.s32.totalorder %s856_s7, %s850_s11 }
  0x75   : > { %v662_v29 = vpack.c.bf16 %v350_v28, %v349_v27  ;;  %v353_v41 = vadd.f32 %v337_v39, %v321_v37  ;;  %v354_v42 = vadd.f32 %v338_v40, %v322_v38  ;;  %v324_v45 = vld [vmem:[#allocation5 + $0x68] sm:$0xff]  ;;  %v339_v46 = vld [vmem:[#allocation7 + $0x60] sm:$0xff]  ;;  %v325_v51 = vld [vmem:[#allocation5 + $0x70] sm:$0xff] }
  0x76   : > { %v665_v36 = vpack.c.bf16 %v352_v35, %v351_v34  ;;  %v340_v47 = vld [vmem:[#allocation7 + $0x68] sm:$0xff]  ;;  %v355_v48 = vadd.f32 %v339_v46, %v323_v44  ;;  %v326_v52 = vld [vmem:[#allocation5 + $0x78] sm:$0xff]  ;;  %v341_v53 = vld [vmem:[#allocation7 + $0x70] sm:$0xff]  ;;  %p859_p9 = por %p858_p5, %p857_p3 }
  0x77   : > { %v668_v43 = vpack.c.bf16 %v354_v42, %v353_v41  ;;  %v356_v49 = vadd.f32 %v340_v47, %v324_v45  ;;  %v342_v54 = vld [vmem:[#allocation7 + $0x78] sm:$0xff]  ;;  %v357_v55 = vadd.f32 %v341_v53, %v325_v51  ;;  %v595_v60 = vld [vmem:[%s1243_s3] ss:$0 sm:$0xff] }
  0x78   : > { %v358_v56 = vadd.f32 %v342_v54, %v326_v52  ;;  %v310_v58 = vld [vmem:[%s1163_s21] sm:$0xff]  ;;  %p860_p11 = pnand %p859_p9, %p853_p10 }
  0x79   : > { %v671_v50 = vpack.c.bf16 %v356_v49, %v355_v48 }
  0x7a   : > { %v674_v57 = vpack.c.bf16 %v358_v56, %v357_v55 }
  0x7b   : > { %657 = vmatpush3.bf16.xpose.msra.mxu0 %v656_v15 }
  0x7c   : > { %658 = vmatprep.subr.bf16.mxu0 %v943_v0 }
  0x83   : > { %660 = vmatpush3.bf16.xpose.msra.mxu0 %v659_v22 }
  0x84   : > { %661 = vmatprep.subr.bf16.mxu0 %v943_v0 }
  0x8b   : > { %663 = vmatpush3.bf16.xpose.msra.mxu0 %v662_v29 }
  0x8c   : > { %664 = vmatprep.subr.bf16.mxu0 %v943_v0 }
  0x93   : > { %666 = vmatpush3.bf16.xpose.msra.mxu0 %v665_v36 }
  0x94   : > { %667 = vmatprep.subr.bf16.mxu0 %v943_v0 }
  0x9b   : > { %669 = vmatpush3.bf16.xpose.msra.mxu0 %v668_v43 }
  0x9c   : > { %670 = vmatprep.subr.bf16.mxu0 %v943_v0 }
  0xa3   : > { %672 = vmatpush3.bf16.xpose.msra.mxu0 %v671_v50 }
  0xa4   : > { %673 = vmatprep.subr.bf16.mxu0 %v943_v0 }
  0xab   : > { %675 = vmatpush3.bf16.xpose.msra.mxu0 %v674_v57 }
  0xb2   : > { %650 = vmatmul.mubr.f32.vlgmr.msra.gmra.mrb[0].mxu0 %v310_v58 }
 0x185   : > { %v425_v59 = vpop.f32.mrb[0].mxu0 }
 0x186   : > { %v651_v61 = vpop.f32.mrb[1].mxu0  ;;  %v442_v62 = vadd.f32 %v595_v60, %v425_v59 }
 0x188   : > { %443 = vst [vmem:[%s298_s12] sm:$0xff] %v442_v62 }
 0x189   : > { %863 = shalt.err (!%p860_p11)
}
 0x18a   : > { %s864_s28 = scalar_lea.hbm %s1191_s10, 128  ;;  %s868_s21 = scalar_lea.hbm %s1244_s4, 256 }
 0x18b   : > { %p865_p0 = scmp.ne.s32.totalorder %s1191_s10, %s864_s28  ;;  %p869_p6 = scmp.lt.u32.totalorder %s1191_s10, %s1244_s4 }
 0x18c   : > { %p870_p7 = scmp.lt.u32.totalorder %s868_s21, %s864_s28  ;;  %p872_p8 = scmp.lt.u32.totalorder %s864_s28, %s1191_s10 }
 0x18d   : > { %p866_p4 = pnand %p865_p0, %p1259_p12 }
 0x18e   : > { %p871_p2 = por %p870_p7, %p869_p6 }
 0x18f   : > { %p867_p13 = pneg %p866_p4 }
 0x190   : > { %p873_p1 = por %p872_p8, %p871_p2 }
 0x192   : > { %p874_p10 = pnand %p873_p1, %p867_p13 }
 0x194   : > { %877 = shalt.err (!%p874_p10)
}
 0x195   : > { %686 = dma.vmem_to_hbm [thread:$0]  (%p1259_p12), %s1193_s13, 128, %s1191_s10, %s445_s9  }
 0x196 PF: > { %s471_s27 = sand.u32 1, %s916_s15   ;;  %p1260_p3 = scmp.ne.s32.totalorder %s1252_s26, 0 }
 0x197   : > { %p1261_p5 = scmp.ge.s32.totalorder %s936_s20, 2  ;;  %s472_s12 = scalar_lea.sflag [#allocation4], %s471_s27 }
 0x199   : > { %p700_p9 = pnand %p1261_p5, %p1260_p3 }
 0x19b   : > { %911 = dma.done.wait (!%p700_p9), %s472_s12, 128  }
 0x19c   : > { %913 = vsyncadd (!%p700_p9), %s472_s12, 4294967168  ;;  %s21_s20 = sadd.s32 1, %s936_s20   ;;  %s1262_s15 = smov %s920_s16 }
 0x19d   : > { %p18_p11 = scmp.ge.s32.totalorder %s21_s20, 4   ;;  %s1263_s16 = smov %s924_s17 }
 0x19e   : > { %s1264_s17 = smov %s1114_s22  ;;  %s1265_s18 = smov %s932_s19 }
 0x19f   : > { %s1266_s19 = smov %s1268_s5  ;;  %20 = sbr.rel (!%p18_p11) target bundleno = 7 (0x7), region = 102 }
 0x1a6   :  { %477 = vsyncpa [#allocation3], 1 }
 0x1a7   :  { %479 = vsyncpa [#allocation3 + $0x1], 1 }
 0x1a8   :  { %480 = vsyncpa [#allocation6], 1 }
 0x1a9   :  { %481 = vsyncpa [#allocation4], 1 }
 0x1aa   :  { %483 = vsyncpa [#allocation4 + $0x1], 1 }

</bundles_post_ra>
